<compile_context>
chip_gen: v5e
topology: v5e:2x2
jax: 0.10.0
libtpu: 0.0.40
codegen_flags: <defaults>
</compile_context>

<pallas_src>
import jax
import jax.numpy as jnp
from jax.experimental import pallas as pl
from jax.experimental.pallas import tpu as pltpu


def _round_up(x: int, m: int) -> int:
    return (x + m - 1) // m * m


def _vmem_budgets():
    """Generation-aware budgets: (encoder-stream budget, scoped VMEM limit)."""
    cap = None
    try:
        cap = getattr(pltpu.get_tpu_info(), "vmem_capacity_bytes", None)
    except Exception:
        cap = None
    if not cap:
        cap = 64 * 1024 * 1024  # conservative default (v7x physical VMEM)
    # Double-buffered encoder stream gets ~1/4 of physical VMEM; scoped limit
    # ~1/2 of physical. On v6e/v5e (128 MiB) this raises both automatically.
    return cap // 4, cap // 2


def _pick_block_b(Bp: int, S: int, Dp: int, itemsize: int, vmem_budget: int) -> int:
    """Pick TB: multiple of 8 dividing Bp, double-buffered encoder block within
    the VMEM budget, and enough grid steps to pipeline DMAs and feed 2 TCs."""
    cands = [tb for tb in range(8, Bp + 1, 8) if Bp % tb == 0]
    fits = [tb for tb in cands if 2 * tb * S * Dp * itemsize <= vmem_budget]
    if not fits:
        # Even TB=8 exceeds the budget (enormous S*D); take the smallest
        # layout-legal block and let the scoped limit absorb it.
        return 8
    for min_grid in (8, 4, 2, 1):       # prefer >= 8 steps, degrade gracefully
        ok = [tb for tb in fits if Bp // tb >= min_grid]
        if ok:
            return max(ok)
    return min(fits)


def _luong_attention_kernel(q_ref, enc_ref, out_ref):
    enc = enc_ref[...]                                    # (TB, S, Dp)
    q = q_ref[...].astype(enc.dtype)                      # (TB, 1, Dp) projected query

    # scores[b, 0, s] = <q_b, enc_{b,s}> — batched MXU contraction, f32 acc.
    scores = jnp.einsum("bqd,bsd->bqs", q, enc,
                        preferred_element_type=jnp.float32)   # (TB, 1, S)

    # Numerically stable softmax over the sequence axis.
    m = jnp.max(scores, axis=-1, keepdims=True)
    p = jnp.exp(scores - m)
    denom = jnp.sum(p, axis=-1, keepdims=True)
    r = pl.reciprocal(denom, approx=True)                 # EUP slot (≈ free)
    r = r * (2.0 - denom * r)                             # one Newton step -> f32
    attn = (p * r).astype(enc.dtype)                      # (TB, 1, S)

    # context[b, 0, d] = sum_s attn[b,s] * enc[b,s,d] — batched MXU, f32 acc.
    ctx = jnp.einsum("bqs,bsd->bqd", attn, enc,
                     preferred_element_type=jnp.float32)  # (TB, 1, Dp)
    out_ref[...] = ctx.astype(out_ref.dtype)


def global_luong_attention(decoder_hidden, encoder_outs, weight, bias):
    """decoder_hidden: (B,1,D), encoder_outs: (B,S,D), weight: (D,D), bias: (D,).

    weight/bias follow torch.nn.Linear convention: y = x @ weight.T + bias.
    """
    B, S, D = encoder_outs.shape
    assert decoder_hidden.shape == (B, 1, D)
    del bias  # <dec, bias> is constant over the sequence axis -> cancels in softmax.

    # Project the query once: q[b, i] = sum_j dec[b, j] * weight[j, i].
    q = jnp.dot(decoder_hidden.reshape(B, D), weight,
                preferred_element_type=jnp.float32).astype(decoder_hidden.dtype)

    # Pad to a lane-dense / sublane-legal layout: D -> multiple of 128 (lane
    # axis of every streamed block and the output), B -> multiple of 8.
    Dp = _round_up(D, 128)
    Bp = _round_up(B, 8)
    pad_b, pad_d = Bp - B, Dp - D
    q3 = q.reshape(B, 1, D)
    if pad_b or pad_d:
        q3 = jnp.pad(q3, ((0, pad_b), (0, 0), (0, pad_d)))
        enc = jnp.pad(encoder_outs, ((0, pad_b), (0, 0), (0, pad_d)))
    else:
        enc = encoder_outs

    itemsize = jnp.dtype(enc.dtype).itemsize
    stream_budget, vmem_limit = _vmem_budgets()
    tb = _pick_block_b(Bp, S, Dp, itemsize, stream_budget)
    grid = (Bp // tb,)

    cost = pl.CostEstimate(
        flops=4 * Bp * S * Dp,                 # two MACs per (b, s, d)
        transcendentals=Bp * S,                # exp in softmax
        bytes_accessed=(Bp * S * Dp + 2 * Bp * Dp) * itemsize,
    )

    ctx = pl.pallas_call(
        _luong_attention_kernel,
        out_shape=jax.ShapeDtypeStruct((Bp, 1, Dp), decoder_hidden.dtype),
        grid_spec=pltpu.PrefetchScalarGridSpec(
            num_scalar_prefetch=0,
            grid=grid,
            in_specs=[
                pl.BlockSpec((tb, 1, Dp), lambda b: (b, 0, 0)),  # projected query
                pl.BlockSpec((tb, S, Dp), lambda b: (b, 0, 0)),  # encoder stream
            ],
            out_specs=pl.BlockSpec((tb, 1, Dp), lambda b: (b, 0, 0)),
        ),
        compiler_params=pltpu.CompilerParams(
            # Batch axis is independent -> sharded across the 2 TCs on v7x.
            dimension_semantics=("parallel",),
            vmem_limit_bytes=vmem_limit,
        ),
        cost_estimate=cost,
    )(q3, enc)

    return ctx[:B, :, :D]


def _reference(decoder_hidden, encoder_outs, weight, bias):
    x = jnp.einsum("bsd,ed->bse", encoder_outs, weight) + bias
    scores = jnp.einsum("bqd,bsd->bqs", decoder_hidden, x)
    attn = jax.nn.softmax(scores, axis=-1)
    return jnp.einsum("bqs,bsd->bqd", attn, encoder_outs)


if __name__ == "__main__":
    B, S, D = 2, 8, 32  # batch, encoder seq len, attention_dim

    key = jax.random.PRNGKey(0)
    k_dec, k_enc, k_w, k_b = jax.random.split(key, 4)

    decoder_hidden = jax.random.normal(k_dec, (B, 1, D), dtype=jnp.float32)
    encoder_outs = jax.random.normal(k_enc, (B, S, D), dtype=jnp.float32)

    # nn.Linear(attention_dim, attention_dim) init: U(-1/sqrt(D), 1/sqrt(D))
    bound = 1.0 / (D ** 0.5)
    weight = jax.random.uniform(k_w, (D, D), jnp.float32, -bound, bound)
    bias = jax.random.uniform(k_b, (D,), jnp.float32, -bound, bound)

    context = global_luong_attention(decoder_hidden, encoder_outs, weight, bias)
    context = jax.block_until_ready(context)

    ref = _reference(decoder_hidden, encoder_outs, weight, bias)
    assert context.shape == (B, 1, D)
    # Tolerance accounts for fp reassociation (query-side projection, bias
    # cancellation in softmax) and MXU f32 matmul passes; accumulation is f32.
    assert jnp.allclose(context, ref, atol=1e-4, rtol=1e-4), "mismatch vs reference"

    print("KERNEL_OK")
</pallas_src>

<mosaic_0001>
module attributes {stable_mosaic.version = 11 : i64} {
  func.func @_luong_attention_kernel(%arg0: i32, %arg1: memref<8x1x128xf32, #tpu.memory_space<vmem>>, %arg2: memref<8x8x128xf32, #tpu.memory_space<vmem>>, %arg3: memref<8x1x128xf32, #tpu.memory_space<vmem>>) attributes {dimension_semantics = [#tpu.dimension_semantics<parallel>], iteration_bounds = array<i64: 1>, scalar_prefetch = 0 : i64, scratch_operands = 0 : i64, tpu.core_type = #tpu.core_type<tc>, window_params = [{transform_indices = @transform_0, window_bounds = array<i64: 8, 1, 128>}, {transform_indices = @transform_1, window_bounds = array<i64: 8, 8, 128>}, {transform_indices = @transform_2, window_bounds = array<i64: 8, 1, 128>}]} {
    %c0 = arith.constant 0 : index
    %c0_0 = arith.constant 0 : index
    %c0_1 = arith.constant 0 : index
    %0 = vector.load %arg2[%c0, %c0_0, %c0_1] : memref<8x8x128xf32, #tpu.memory_space<vmem>>, vector<8x8x128xf32>
    %c0_2 = arith.constant 0 : index
    %c0_3 = arith.constant 0 : index
    %c0_4 = arith.constant 0 : index
    %1 = vector.load %arg1[%c0_2, %c0_3, %c0_4] : memref<8x1x128xf32, #tpu.memory_space<vmem>>, vector<8x1x128xf32>
    "tpu.trace_start"() <{level = 10 : i32, message = "bqd,bsd->bqs"}> : () -> ()
    %cst = arith.constant dense<0.000000e+00> : vector<8x1x8xf32>
    %2 = tpu.matmul %1, %0, %cst {dimension_numbers = #tpu.dot_dimension_numbers<[2], [2], [1], [1], [0, 0, 0, 1, 1, 1], [0], [0]>} : vector<8x1x128xf32>, vector<8x8x128xf32>, vector<8x1x8xf32> -> vector<8x1x8xf32>
    "tpu.trace_stop"() : () -> ()
    %cst_5 = arith.constant dense<0xFF800000> : vector<8x1xf32>
    %3 = vector.multi_reduction <maximumf>, %2, %cst_5 [2] : vector<8x1x8xf32> to vector<8x1xf32>
    %4 = vector.shape_cast %3 : vector<8x1xf32> to vector<8x1x1xf32>
    %5 = vector.broadcast %4 : vector<8x1x1xf32> to vector<8x1x8xf32>
    %6 = arith.subf %2, %5 : vector<8x1x8xf32>
    %7 = math.exp %6 : vector<8x1x8xf32>
    %cst_6 = arith.constant dense<0.000000e+00> : vector<8x1xf32>
    %8 = vector.multi_reduction <add>, %7, %cst_6 [2] : vector<8x1x8xf32> to vector<8x1xf32>
    %9 = vector.shape_cast %8 : vector<8x1xf32> to vector<8x1x1xf32>
    %10 = tpu.reciprocal %9 {approx = true} : vector<8x1x1xf32> -> vector<8x1x1xf32>
    %11 = arith.mulf %9, %10 : vector<8x1x1xf32>
    %cst_7 = arith.constant 2.000000e+00 : f32
    %12 = vector.broadcast %cst_7 : f32 to vector<8x1x1xf32>
    %13 = arith.subf %12, %11 : vector<8x1x1xf32>
    %14 = arith.mulf %10, %13 : vector<8x1x1xf32>
    %15 = vector.broadcast %14 : vector<8x1x1xf32> to vector<8x1x8xf32>
    %16 = arith.mulf %7, %15 : vector<8x1x8xf32>
    "tpu.trace_start"() <{level = 10 : i32, message = "bqs,bsd->bqd"}> : () -> ()
    %cst_8 = arith.constant dense<0.000000e+00> : vector<8x1x128xf32>
    %17 = tpu.matmul %16, %0, %cst_8 {dimension_numbers = #tpu.dot_dimension_numbers<[2], [1], [1], [2], [0, 0, 0, 1, 1, 2], [0], [0]>} : vector<8x1x8xf32>, vector<8x8x128xf32>, vector<8x1x128xf32> -> vector<8x1x128xf32>
    "tpu.trace_stop"() : () -> ()
    %c0_9 = arith.constant 0 : index
    %c0_10 = arith.constant 0 : index
    %c0_11 = arith.constant 0 : index
    %18 = vector.load %arg3[%c0_9, %c0_10, %c0_11] : memref<8x1x128xf32, #tpu.memory_space<vmem>>, vector<8x1x128xf32>
    tpu.vector_store %arg3[%c0_9, %c0_10, %c0_11], %17 {strides = array<i32>} : memref<8x1x128xf32, #tpu.memory_space<vmem>>, vector<8x1x128xf32>,
    return
  }
  func.func @transform_0(%arg0: i32) -> (i32, i32, i32) {
    %c0_i32 = arith.constant 0 : i32
    %c0_i32_0 = arith.constant 0 : i32
    %c0_i32_1 = arith.constant 0 : i32
    return %arg0, %c0_i32, %c0_i32_0 : i32, i32, i32
  }
  func.func @transform_1(%arg0: i32) -> (i32, i32, i32) {
    %c0_i32 = arith.constant 0 : i32
    %c0_i32_0 = arith.constant 0 : i32
    %c0_i32_1 = arith.constant 0 : i32
    return %arg0, %c0_i32, %c0_i32_0 : i32, i32, i32
  }
  func.func @transform_2(%arg0: i32) -> (i32, i32, i32) {
    %c0_i32 = arith.constant 0 : i32
    %c0_i32_0 = arith.constant 0 : i32
    %c0_i32_1 = arith.constant 0 : i32
    return %arg0, %c0_i32, %c0_i32_0 : i32, i32, i32
  }
}

</mosaic_0001>

<bundles_post_ra>
// kernel: tpu_custom_call.1
= control target key start
LH: loop header
LB: loop body
LE: loop exit
PB: predicated region body
PF: predicated region fallthrough
CT: control target
= control target key end

     0   :  { %7 = vsyncpa [#allocation3], 0  ;;  %s752_s0 = inlined_call_operand.hbm [shape: f32[8,1,128], index: 0, kind: input, shape index: {}]   ;;  %s753_s1 = inlined_call_operand.hbm [shape: f32[8,8,128], index: 1, kind: input, shape index: {}]   ;;  %s754_s2 = inlined_call_operand.hbm [shape: f32[8,1,128], index: 2, kind: output, shape index: {}]  }
   0x1   :  { %8 = vsyncpa [#allocation6], 0 }
   0x2   :  { %9 = vsyncpa [#allocation4], 0  ;;  %s14_s11 = sshll.u32 %s752_s0, 4  ;;  %s671_s12 = smov [#allocation2]   ;;  %s15_s11 = int_to_ptr.hbm [resolvable:$true] %s14_s11 }
   0x3   :  { %s16_s13 = sshll.u32 %s671_s12, 4  ;;  %s27_s16 = sshll.u32 %s753_s1, 4  ;;  %s17_s13 = int_to_ptr.vmem [resolvable:$true] %s16_s13  ;;  %s28_s16 = int_to_ptr.hbm [resolvable:$true] %s27_s16 }
   0x4   :  { %s672_s17 = smov 16   ;;  %s673_s18 = smov 1  }
   0x5   :  { %22 = dma.hbm_to_vmem [thread:$0]  %s15_s11, 128, %s17_s13, [#allocation3], %s672_s17, %s672_s17, %s673_s18  }
   0x6   :  { %s674_s19 = smov [#allocation5]   ;;  %s675_s21 = smov 128  }
   0x7   :  { %s29_s20 = sshll.u32 %s674_s19, 4  ;;  %s676_s0 = smov 8   ;;  %s30_s20 = int_to_ptr.vmem [resolvable:$true] %s29_s20 }
   0x8   :  { %35 = dma.hbm_to_vmem [thread:$0]  %s28_s16, 1024, %s30_s20, [#allocation6], %s675_s21, %s675_s21, %s676_s0  }
   0x9   :  { %665 = dma.done.wait [#allocation3], 128  }
   0xa   :  { %666 = vsyncadd [#allocation3], 4294967168 }
   0xb   :  { %667 = dma.done.wait [#allocation6], 1024  }
   0xc   :  { %668 = vsyncadd [#allocation6], 4294966272  ;;  %v44_v0 = vld [vmem:[#allocation5] sm:$0xff]  ;;  %v46_v1 = vld [vmem:[#allocation5 + $0x10] sm:$0xff]  ;;  %vm220_vm0 = vcmask 57344   ;;  %vm333_vm1 = vcmask 64512  }
   0xd   :  { %v52_v2 = vld [vmem:[#allocation2] sm:$0x1]  ;;  %75 = vmatpush.xpose.msra.mxu0 %v44_v0  ;;  %115 = vmatpush.xpose.msra.mxu2 %v46_v1  ;;  %v54_v3 = vld [vmem:[#allocation2 + $0x2] sm:$0x1]  ;;  %v50_v4 = vld [vmem:[#allocation5 + $0x30] sm:$0xff]  ;;  %s677_s1 = smov [#allocation7]  }
   0xe   :  { %v45_v5 = vld [vmem:[#allocation5 + $0x8] sm:$0xff]  ;;  %v47_v6 = vld [vmem:[#allocation5 + $0x18] sm:$0xff]  ;;  %v48_v11 = vld [vmem:[#allocation5 + $0x20] sm:$0xff]  ;;  %s530_s22 = sshll.u32 %s677_s1, 4  ;;  %s532_s25 = sshll.u32 %s754_s2, 4  ;;  %s531_s22 = int_to_ptr.vmem [resolvable:$true] %s530_s22  ;;  %s533_s25 = int_to_ptr.hbm [resolvable:$true] %s532_s25 }
   0xf   :  { %95 = vmatpush.xpose.msra.mxu1 %v45_v5  ;;  %v53_v7 = vld [vmem:[#allocation2 + $0x1] sm:$0x1]  ;;  %135 = vmatpush.xpose.msra.mxu3 %v47_v6  ;;  %v55_v8 = vld [vmem:[#allocation2 + $0x3] sm:$0x1]  ;;  %v49_v10 = vld [vmem:[#allocation5 + $0x28] sm:$0xff] }
  0x10   :  { %v51_v9 = vld [vmem:[#allocation5 + $0x38] sm:$0xff]  ;;  %76 = vmatmul.f32.vlgmr.msra.gmra.mxu0 %v52_v2  ;;  %116 = vmatmul.f32.vlgmr.msra.gmra.mxu2 %v54_v3 }
  0x11   :  { %195 = vmatpush.xpose.msrb.mxu2 %v50_v4  ;;  %155 = vmatpush.xpose.msrb.mxu0 %v48_v11  ;;  %v58_v12 = vld [vmem:[#allocation2 + $0x6] sm:$0x1]  ;;  %v56_v13 = vld [vmem:[#allocation2 + $0x4] sm:$0x1]  ;;  %v57_v14 = vld [vmem:[#allocation2 + $0x5] sm:$0x1] }
  0x12   :  { %96 = vmatmul.f32.vlgmr.msra.gmra.mxu1 %v53_v7  ;;  %136 = vmatmul.f32.vlgmr.msra.gmra.mxu3 %v55_v8  ;;  %v59_v15 = vld [vmem:[#allocation2 + $0x7] sm:$0x1] }
  0x13   :  { %215 = vmatpush.xpose.msrb.mxu3 %v51_v9  ;;  %175 = vmatpush.xpose.msrb.mxu1 %v49_v10 }
  0x15   :  { %398 = vmatpush.msra.mxu2 %v46_v1  ;;  %352 = vmatpush.msra.mxu0 %v44_v0 }
  0x17   :  { %421 = vmatpush.msra.mxu3 %v47_v6  ;;  %375 = vmatpush.msra.mxu1 %v45_v5 }
  0x18   :  { %196 = vmatmul.f32.vlgmr.msrb.gmra.mxu2 %v58_v12  ;;  %156 = vmatmul.f32.vlgmr.msrb.gmra.mxu0 %v56_v13 }
  0x19   :  { %490 = vmatpush.msrb.mxu2 %v50_v4  ;;  %444 = vmatpush.msrb.mxu0 %v48_v11 }
  0x1a   :  { %176 = vmatmul.f32.vlgmr.msrb.gmra.mxu1 %v57_v14  ;;  %216 = vmatmul.f32.vlgmr.msrb.gmra.mxu3 %v59_v15 }
  0x1b   :  { %513 = vmatpush.msrb.mxu3 %v51_v9  ;;  %467 = vmatpush.msrb.mxu1 %v49_v10 }
  0x8d   :  { %v77_v16 = vpop.f32.mrf.mxu0 }
  0x8e   :  { %v221_v17 = vsel %vm220_vm0, %v77_v16, -inf }
  0x8f   :  { %222 = vmax.xlane.f32.xlu1 %v221_v17  ;;  %v97_v18 = vpop.f32.mrf.mxu1 }
  0x90   :  { %v224_v21 = vsel %vm220_vm0, %v97_v18, -inf }
  0x93   :  { %v117_v19 = vpop.f32.mrf.mxu2 }
  0x94   :  { %v227_v20 = vsel %vm220_vm0, %v117_v19, -inf }
  0x95   :  { %228 = vmax.xlane.f32.xlu0 %v227_v20  ;;  %v137_v22 = vpop.f32.mrf.mxu3  ;;  %v157_v28 = vpop.f32.mrf.mxu0 }
  0x96   :  { %v230_v24 = vsel %vm220_vm0, %v137_v22, -inf  ;;  %v233_v31 = vsel %vm220_vm0, %v157_v28, -inf }
  0x97   :  { %225 = vmax.xlane.f32.xlu1 %v224_v21  ;;  %v177_v23 = vpop.f32.mrf.mxu1 }
  0x98   :  { %v236_v27 = vsel %vm220_vm0, %v177_v23, -inf }
  0x9b   :  { %v197_v25 = vpop.f32.mrf.mxu2 }
  0x9c   :  { %v239_v26 = vsel %vm220_vm0, %v197_v25, -inf }
  0x9d   :  { %231 = vmax.xlane.f32.xlu0 %v230_v24  ;;  %240 = vmax.xlane.f32.xlu2 %v239_v26  ;;  %v217_v29 = vpop.f32.mrf.mxu3 }
  0x9e   :  { %v242_v30 = vsel %vm220_vm0, %v217_v29, -inf }
  0x9f   :  { %237 = vmax.xlane.f32.xlu1 %v236_v27 }
  0xa5   :  { %243 = vmax.xlane.f32.xlu2 %v242_v30  ;;  %234 = vmax.xlane.f32.xlu0 %v233_v31 }
 0x102   :  { %v223_v32 = vpop.xlane.xlu1 %222 }
 0x103   :  { %v245_v33 = vsub.f32 %v77_v16, %v223_v32 }
 0x105   :  { %v253_v34 = vmul.f32 1.442695, %v245_v33 }
 0x107   :  { %561 = vpow2.f32 %v253_v34 }
 0x108   :  { %v229_v35 = vpop.xlane.xlu0 %228 }
 0x109   :  { %v247_v36 = vsub.f32 %v117_v19, %v229_v35 }
 0x10a   :  { %v226_v37 = vpop.xlane.xlu1 %225 }
 0x10b   :  { %v257_v38 = vmul.f32 1.442695, %v247_v36  ;;  %v246_v39 = vsub.f32 %v97_v18, %v226_v37 }
 0x10d   :  { %v562_v40 = vpop.eup %561  ;;  %563 = vpow2.f32 %v257_v38  ;;  %v255_v42 = vmul.f32 1.442695, %v246_v39 }
 0x10e   :  { %v269_v41 = vsel %vm220_vm0, %v562_v40, 0.0 }
 0x10f   :  { %270 = vadd.xlane.f32.xlu1 %v269_v41  ;;  %565 = vpow2.f32 %v255_v42 }
 0x110   :  { %v232_v43 = vpop.xlane.xlu0 %231  ;;  %v241_v44 = vpop.xlane.xlu2 %240 }
 0x111   :  { %v248_v45 = vsub.f32 %v137_v22, %v232_v43  ;;  %v251_v48 = vsub.f32 %v197_v25, %v241_v44 }
 0x112   :  { %v238_v51 = vpop.xlane.xlu1 %237 }
 0x113   :  { %v564_v46 = vpop.eup %563  ;;  %v259_v47 = vmul.f32 1.442695, %v248_v45  ;;  %v265_v50 = vmul.f32 1.442695, %v251_v48  ;;  %v250_v58 = vsub.f32 %v177_v23, %v238_v51 }
 0x114   :  { %v275_v49 = vsel %vm220_vm0, %v564_v46, 0.0 }
 0x115   :  { %567 = vpow2.f32 %v259_v47  ;;  %276 = vadd.xlane.f32.xlu2 %v275_v49  ;;  %v712_v54 = vpop.eup %565  ;;  %v263_v63 = vmul.f32 1.442695, %v250_v58 }
 0x116   :  { %569 = vpow2.f32 %v265_v50  ;;  %v272_v61 = vsel %vm220_vm0, %v712_v54, 0.0 }
 0x118   :  { %v244_v52 = vpop.xlane.xlu2 %243  ;;  %v235_v53 = vpop.xlane.xlu0 %234 }
 0x119   :  { %v252_v55 = vsub.f32 %v217_v29, %v244_v52  ;;  %v249_v56 = vsub.f32 %v157_v28, %v235_v53 }
 0x11b   :  { %v568_v57 = vpop.eup %567  ;;  %v267_v59 = vmul.f32 1.442695, %v252_v55  ;;  %v261_v60 = vmul.f32 1.442695, %v249_v56 }
 0x11c   :  { %v278_v62 = vsel %vm220_vm0, %v568_v57, 0.0  ;;  %v717_v0 = vpop.eup %569 }
 0x11d   :  { %571 = vpow2.f32 %v267_v59  ;;  %273 = vadd.xlane.f32.xlu2 %v272_v61  ;;  %279 = vadd.xlane.f32.xlu0 %v278_v62  ;;  %v287_v4 = vsel %vm220_vm0, %v717_v0, 0.0 }
 0x11e   :  { %573 = vpow2.f32 %v261_v60 }
 0x11f   :  { %575 = vpow2.f32 %v263_v63 }
 0x123   :  { %v719_v1 = vpop.eup %571 }
 0x124   :  { %v721_v2 = vpop.eup %573  ;;  %v290_v3 = vsel %vm220_vm0, %v719_v1, 0.0 }
 0x125   :  { %291 = vadd.xlane.f32.xlu1 %v290_v3  ;;  %288 = vadd.xlane.f32.xlu0 %v287_v4  ;;  %v281_v5 = vsel %vm220_vm0, %v721_v2, 0.0  ;;  %v729_v6 = vpop.eup %575 }
 0x126   :  { %282 = vadd.xlane.f32.xlu2 %v281_v5  ;;  %v284_v7 = vsel %vm220_vm0, %v729_v6, 0.0 }
 0x12d   :  { %285 = vadd.xlane.f32.xlu0 %v284_v7 }
 0x182   :  { %v271_v8 = vpop.xlane.xlu1 %270 }
 0x183   :  { %577 = vrcp.f32 %v271_v8 }
 0x188   :  { %v277_v9 = vpop.xlane.xlu2 %276 }
 0x189   :  { %v578_v10 = vpop.eup %577  ;;  %579 = vrcp.f32 %v277_v9 }
 0x18a   :  { %v301_v11 = vmul.f32 %v578_v10, %v271_v8 }
 0x18c   :  { %v309_v12 = vsub.f32 2.0, %v301_v11 }
 0x18e   :  { %v317_v13 = vmul.f32 %v578_v10, %v309_v12 }
 0x18f   :  { %v580_v14 = vpop.eup %579 }
 0x190   :  { %v325_v15 = vmul.f32 %v562_v40, %v317_v13  ;;  %v303_v16 = vmul.f32 %v580_v14, %v277_v9  ;;  %v274_v17 = vpop.xlane.xlu2 %273  ;;  %v280_v18 = vpop.xlane.xlu0 %279 }
 0x191   :  { %581 = vrcp.f32 %v274_v17 }
 0x192   :  { %v311_v19 = vsub.f32 2.0, %v303_v16  ;;  %583 = vrcp.f32 %v280_v18  ;;  %546 = vmatmul.msk.f32.vlgmr.msra.gmra.mxu0 %vm333_vm1, %v325_v15 }
 0x194   :  { %v319_v20 = vmul.f32 %v580_v14, %v311_v19 }
 0x196   :  { %v327_v21 = vmul.f32 %v564_v46, %v319_v20 }
 0x197   :  { %v582_v22 = vpop.eup %581 }
 0x198   :  { %v584_v23 = vpop.eup %583  ;;  %v302_v24 = vmul.f32 %v582_v22, %v274_v17  ;;  %548 = vmatmul.msk.f32.vlgmr.msra.gmra.mxu2 %vm333_vm1, %v327_v21  ;;  %v292_v25 = vpop.xlane.xlu1 %291 }
 0x199   :  { %v289_v26 = vpop.xlane.xlu0 %288  ;;  %v304_v27 = vmul.f32 %v584_v23, %v280_v18  ;;  %585 = vrcp.f32 %v292_v25  ;;  %v283_v28 = vpop.xlane.xlu2 %282 }
 0x19a   :  { %v310_v29 = vsub.f32 2.0, %v302_v24  ;;  %587 = vrcp.f32 %v283_v28 }
 0x19b   :  { %v312_v30 = vsub.f32 2.0, %v304_v27  ;;  %589 = vrcp.f32 %v289_v26 }
 0x19c   :  { %v318_v31 = vmul.f32 %v582_v22, %v310_v29 }
 0x19d   :  { %v320_v32 = vmul.f32 %v584_v23, %v312_v30 }
 0x19e   :  { %v326_v33 = vmul.f32 %v712_v54, %v318_v31 }
 0x19f   :  { %v586_v34 = vpop.eup %585  ;;  %v328_v35 = vmul.f32 %v568_v57, %v320_v32 }
 0x1a0   :  { %v588_v36 = vpop.eup %587  ;;  %v308_v37 = vmul.f32 %v586_v34, %v292_v25  ;;  %547 = vmatmul.msk.f32.vlgmr.msra.gmra.mxu1 %vm333_vm1, %v326_v33 }
 0x1a1   :  { %v286_v38 = vpop.xlane.xlu0 %285  ;;  %v590_v39 = vpop.eup %589  ;;  %v305_v40 = vmul.f32 %v588_v36, %v283_v28  ;;  %549 = vmatmul.msk.f32.vlgmr.msra.gmra.mxu3 %vm333_vm1, %v328_v35 }
 0x1a2   :  { %591 = vrcp.f32 %v286_v38  ;;  %v316_v41 = vsub.f32 2.0, %v308_v37  ;;  %v307_v42 = vmul.f32 %v590_v39, %v289_v26 }
 0x1a3   :  { %v313_v43 = vsub.f32 2.0, %v305_v40 }
 0x1a4   :  { %v324_v44 = vmul.f32 %v586_v34, %v316_v41  ;;  %v315_v45 = vsub.f32 2.0, %v307_v42 }
 0x1a5   :  { %v321_v46 = vmul.f32 %v588_v36, %v313_v43 }
 0x1a6   :  { %v332_v47 = vmul.f32 %v719_v1, %v324_v44  ;;  %v323_v48 = vmul.f32 %v590_v39, %v315_v45 }
 0x1a7   :  { %v329_v50 = vmul.f32 %v721_v2, %v321_v46 }
 0x1a8   :  { %v592_v49 = vpop.eup %591  ;;  %v331_v51 = vmul.f32 %v717_v0, %v323_v48 }
 0x1a9   :  { %v306_v52 = vmul.f32 %v592_v49, %v286_v38  ;;  %550 = vmatmul.msk.f32.vlgmr.msrb.gmra.mxu0 %vm333_vm1, %v329_v50  ;;  %553 = vmatmul.msk.f32.vlgmr.msrb.gmra.mxu3 %vm333_vm1, %v332_v47 }
 0x1aa   :  { %552 = vmatmul.msk.f32.vlgmr.msrb.gmra.mxu2 %vm333_vm1, %v331_v51 }
 0x1ab   :  { %v314_v53 = vsub.f32 2.0, %v306_v52 }
 0x1ad   :  { %v322_v54 = vmul.f32 %v592_v49, %v314_v53 }
 0x1af   :  { %v330_v55 = vmul.f32 %v729_v6, %v322_v54 }
 0x1b1   :  { %551 = vmatmul.msk.f32.vlgmr.msrb.gmra.mxu1 %vm333_vm1, %v330_v55 }
 0x20f   :  { %v354_v56 = vpop.f32.mrf.mxu0 }
 0x210   :  { %518 = vst [vmem:[#allocation7] sm:$0x1] %v354_v56 }
 0x21b   :  { %v400_v57 = vpop.f32.mrf.mxu2 }
 0x21c   :  { %520 = vst [vmem:[#allocation7 + $0x2] sm:$0x1] %v400_v57 }
 0x21d   :  { %v377_v58 = vpop.f32.mrf.mxu1 }
 0x21e   :  { %519 = vst [vmem:[#allocation7 + $0x1] sm:$0x1] %v377_v58 }
 0x224   :  { %v423_v59 = vpop.f32.mrf.mxu3 }
 0x225   :  { %521 = vst [vmem:[#allocation7 + $0x3] sm:$0x1] %v423_v59 }
 0x226   :  { %v446_v60 = vpop.f32.mrf.mxu0 }
 0x227   :  { %522 = vst [vmem:[#allocation7 + $0x4] sm:$0x1] %v446_v60 }
 0x22c   :  { %v515_v61 = vpop.f32.mrf.mxu3 }
 0x22d   :  { %v492_v62 = vpop.f32.mrf.mxu2  ;;  %525 = vst [vmem:[#allocation7 + $0x7] sm:$0x1] %v515_v61 }
 0x22e   :  { %v469_v63 = vpop.f32.mrf.mxu1  ;;  %524 = vst [vmem:[#allocation7 + $0x6] sm:$0x1] %v492_v62 }
 0x22f   :  { %523 = vst [vmem:[#allocation7 + $0x5] sm:$0x1] %v469_v63 }
 0x230   :  { %538 = dma.vmem_to_hbm [thread:$0]  %s531_s22, 128, %s533_s25, [#allocation4], %s672_s17, %s672_s17, %s673_s18  }
 0x231   :  { %669 = dma.done.wait [#allocation4], 128  }
 0x232   :  { %670 = vsyncadd [#allocation4], 4294967168 }
 0x233   :  { %543 = vsyncpa [#allocation3], 1 }
 0x234   :  { %544 = vsyncpa [#allocation6], 1 }
 0x235   :  { %545 = vsyncpa [#allocation4], 1 }

</bundles_post_ra>
